<compile_context>
chip_gen: v5e
topology: v5e:2x2
jax: 0.10.0
libtpu: 0.0.40
codegen_flags: <defaults>
</compile_context>

<pallas_src>
import jax
import jax.numpy as jnp
from jax.experimental import pallas as pl
from jax.experimental.pallas import tpu as pltpu


def _make_kernel(inv_hw):
    """inv_hw = 1 / (true H*W); the lane axis may be zero-padded past HW."""

    def channel_attention_kernel(x_ref, w1t_ref, b1_ref, w2t_ref, b2_ref, o_ref):
        x = x_ref[...]                                          # (Bt, C, HWp) f32

        # Single-pass channel stats (padded lanes are zero, so plain sums over
        # the lane axis already exclude them; divide by the true HW).
        mean_c = jnp.sum(x, axis=2) * inv_hw                    # (Bt, C)
        msq_c = jnp.sum(x * x, axis=2) * inv_hw                 # (Bt, C)
        var_c = jnp.maximum(msq_c - mean_c * mean_c, 0.0)       # clamp cancellation
        y = jnp.sqrt(var_c) + mean_c                            # contrast + avg_pool

        # conv_du: 1x1 conv -> ReLU -> 1x1 conv -> sigmoid.  Tiny (Bt,C)x(C,Cr)
        # matmuls -- negligible cycles, MXU shape irrelevant.
        h = jnp.dot(y, w1t_ref[...], preferred_element_type=jnp.float32) + b1_ref[...]
        h = jnp.maximum(h, 0.0)                                 # (Bt, Cr)
        z = jnp.dot(h, w2t_ref[...], preferred_element_type=jnp.float32) + b2_ref[...]
        z = jax.nn.sigmoid(z)                                   # (Bt, C)

        o_ref[...] = x * (z[:, :, None] + 1.0)                  # (Bt, C, HWp)

    return channel_attention_kernel


def _vmem_capacity_bytes():
    """Per-TensorCore VMEM; conservative 64 MiB (v7x) fallback."""
    try:
        info = pltpu.get_tpu_info()
        v = getattr(info, "vmem_capacity_bytes", None)
        if v:
            return int(v)
    except Exception:
        pass
    return 64 << 20


def _pick_batch_block(B, bytes_per_image, vmem_bytes):
    """Largest batch block that fits the per-chip VMEM budget.

    Per grid step this kernel needs the input block and the output block, each
    double-buffered by the BlockSpec pipeline: ~4 * Bt * bytes_per_image.
    """
    cap_pipeline = int(0.6 * vmem_bytes) // 4
    # Per-generation absolute cap: 64-MiB-VMEM chips (v7x) vs 128-MiB (v5e/v6e).
    cap_abs = (11 << 20) if vmem_bytes <= (64 << 20) else (22 << 20)
    cap = min(cap_pipeline, cap_abs)
    bt_max = max(1, cap // max(1, bytes_per_image))

    divisors = [d for d in range(1, B + 1) if B % d == 0 and d <= bt_max]
    if not divisors:
        divisors = [1]
    best = max(divisors)
    # Prefer >= 2 grid steps so the pipeline has a steady state (prefetch i+1 /
    # write back i-1 while computing i), but never shrink the block by more
    # than 2x -- and never all the way to Bt=1 -- just to get more steps.
    good = [d for d in divisors
            if (B // d) >= 2 and 2 * d >= best and (d > 1 or best == 1)]
    return max(good) if good else best


def channel_attention_forward(x, params, *, batch_block=None, donate_x=False):
    """x: (B, C, H, W) float32, NCHW like the PyTorch module."""
    B, C, H, W = x.shape
    HW = H * W
    HW_pad = ((HW + 127) // 128) * 128          # lane-dense stores
    w1, b1, w2, b2 = params                     # w1: (Cr, C), b1: (Cr,), w2: (C, Cr), b2: (C,)
    Cr = w1.shape[0]

    vmem_bytes = _vmem_capacity_bytes()
    bytes_per_image = C * HW_pad * 4
    if batch_block is None:
        batch_block = _pick_batch_block(B, bytes_per_image, vmem_bytes)
    assert B % batch_block == 0
    num_steps = B // batch_block

    x_flat = x.reshape(B, C, HW)
    if HW_pad != HW:
        x_flat = jnp.pad(x_flat, ((0, 0), (0, 0), (0, HW_pad - HW)))

    w1t = w1.T                                  # (C, Cr)
    w2t = w2.T                                  # (Cr, C)
    b1r = b1.reshape(1, Cr)
    b2r = b2.reshape(1, C)

    # Advisory cost hint (per-step re-fetch of the tiny weights/biases omitted;
    # Pallas keeps constant-index blocks resident anyway).
    flops = 5 * B * C * HW_pad + 4 * B * C * Cr
    bytes_accessed = 2 * B * C * HW_pad * 4 + 4 * (2 * C * Cr + C + Cr)
    transcendentals = 2 * B * C                 # sqrt + sigmoid per (b, c)

    # Optional in-place write over (a copy of) x; does not reduce HBM traffic
    # but avoids an extra XLA copy when the caller donates x.  Only valid when
    # no lane padding changed the shape.
    io_aliases = {0: 0} if (donate_x and HW_pad == HW) else {}

    out_flat = pl.pallas_call(
        _make_kernel(1.0 / HW),
        out_shape=jax.ShapeDtypeStruct((B, C, HW_pad), jnp.float32),
        grid=(num_steps,),
        in_specs=[
            pl.BlockSpec((batch_block, C, HW_pad), lambda b: (b, 0, 0)),   # x block
            pl.BlockSpec((C, Cr), lambda b: (0, 0)),                       # w1^T
            pl.BlockSpec((1, Cr), lambda b: (0, 0)),                       # b1
            pl.BlockSpec((Cr, C), lambda b: (0, 0)),                       # w2^T
            pl.BlockSpec((1, C), lambda b: (0, 0)),                        # b2
        ],
        out_specs=pl.BlockSpec((batch_block, C, HW_pad), lambda b: (b, 0, 0)),
        input_output_aliases=io_aliases,
        compiler_params=pltpu.CompilerParams(
            dimension_semantics=("parallel",),
            vmem_limit_bytes=min(int(0.75 * vmem_bytes), 100 << 20)),
        cost_estimate=pl.CostEstimate(
            flops=flops,
            transcendentals=transcendentals,
            bytes_accessed=bytes_accessed),
    )(x_flat, w1t, b1r, w2t, b2r)

    if HW_pad != HW:
        out_flat = out_flat[:, :, :HW]
    return out_flat.reshape(B, C, H, W)


def ref_forward(x, params):
    """Pure-JAX reference matching the PyTorch ChannelAttention semantics."""
    w1, b1, w2, b2 = params
    mean_c = jnp.mean(x, axis=(2, 3), keepdims=True)
    std_c = jnp.sqrt(jnp.mean((x - mean_c) ** 2, axis=(2, 3), keepdims=True))
    y = (std_c + mean_c)[:, :, 0, 0]                     # (B, C)
    h = jax.nn.relu(y @ w1.T + b1)                       # (B, Cr)
    z = jax.nn.sigmoid(h @ w2.T + b2)                    # (B, C)
    return x * (z[:, :, None, None] + 1.0)


if __name__ == "__main__":
    # Small but valid shapes: channel=16, reduction=4 -> Cr=4 (reduction=16
    # would give a zero-width hidden layer at these small channel counts).
    B, C, H, W = 4, 16, 16, 16
    reduction = 4
    Cr = C // reduction

    key = jax.random.PRNGKey(0)
    k_x, k_w1, k_b1, k_w2, k_b2 = jax.random.split(key, 5)

    x = jax.random.normal(k_x, (B, C, H, W), dtype=jnp.float32)

    # Parameters follow nn.Conv2d(C, Cr, 1) / nn.Conv2d(Cr, C, 1) weight shapes
    # (squeezed to 2-D since the kernel size is 1x1).
    w1 = 0.3 * jax.random.normal(k_w1, (Cr, C), dtype=jnp.float32)
    b1 = 0.1 * jax.random.normal(k_b1, (Cr,), dtype=jnp.float32)
    w2 = 0.3 * jax.random.normal(k_w2, (C, Cr), dtype=jnp.float32)
    b2 = 0.1 * jax.random.normal(k_b2, (C,), dtype=jnp.float32)

    params = (w1, b1, w2, b2)

    out = channel_attention_forward(x, params)
    out = jax.block_until_ready(out)

    ref = ref_forward(x, params)
    assert out.shape == (B, C, H, W)
    assert jnp.allclose(out, ref, atol=1e-5, rtol=1e-5), \
        f"max abs err {jnp.max(jnp.abs(out - ref))}"

    print("KERNEL_OK")
</pallas_src>

<mosaic_0001>
module attributes {stable_mosaic.version = 11 : i64} {
  func.func @channel_attention_kernel(%arg0: i32, %arg1: memref<2x16x256xf32, #tpu.memory_space<vmem>>, %arg2: memref<16x4xf32, #tpu.memory_space<vmem>>, %arg3: memref<1x4xf32, #tpu.memory_space<vmem>>, %arg4: memref<4x16xf32, #tpu.memory_space<vmem>>, %arg5: memref<1x16xf32, #tpu.memory_space<vmem>>, %arg6: memref<2x16x256xf32, #tpu.memory_space<vmem>>) attributes {dimension_semantics = [#tpu.dimension_semantics<parallel>], iteration_bounds = array<i64: 2>, scalar_prefetch = 0 : i64, scratch_operands = 0 : i64, tpu.core_type = #tpu.core_type<tc>, window_params = [{transform_indices = @transform_0, window_bounds = array<i64: 2, 16, 256>}, {pipeline_mode = #tpu.pipeline_mode<synchronous>, transform_indices = @transform_1, window_bounds = array<i64: 16, 4>}, {pipeline_mode = #tpu.pipeline_mode<synchronous>, transform_indices = @transform_2, window_bounds = array<i64: 1, 4>}, {pipeline_mode = #tpu.pipeline_mode<synchronous>, transform_indices = @transform_3, window_bounds = array<i64: 4, 16>}, {pipeline_mode = #tpu.pipeline_mode<synchronous>, transform_indices = @transform_4, window_bounds = array<i64: 1, 16>}, {transform_indices = @transform_5, window_bounds = array<i64: 2, 16, 256>}]} {
    %c0 = arith.constant 0 : index
    %c0_0 = arith.constant 0 : index
    %c0_1 = arith.constant 0 : index
    %0 = vector.load %arg1[%c0, %c0_0, %c0_1] : memref<2x16x256xf32, #tpu.memory_space<vmem>>, vector<2x16x256xf32>
    %cst = arith.constant dense<0.000000e+00> : vector<2x16xf32>
    %1 = vector.multi_reduction <add>, %0, %cst [2] : vector<2x16x256xf32> to vector<2x16xf32>
    %cst_2 = arith.constant 3.906250e-03 : f32
    %2 = vector.broadcast %cst_2 : f32 to vector<2x16xf32>
    %3 = arith.mulf %1, %2 : vector<2x16xf32>
    %4 = arith.mulf %0, %0 : vector<2x16x256xf32>
    %cst_3 = arith.constant dense<0.000000e+00> : vector<2x16xf32>
    %5 = vector.multi_reduction <add>, %4, %cst_3 [2] : vector<2x16x256xf32> to vector<2x16xf32>
    %cst_4 = arith.constant 3.906250e-03 : f32
    %6 = vector.broadcast %cst_4 : f32 to vector<2x16xf32>
    %7 = arith.mulf %5, %6 : vector<2x16xf32>
    %8 = arith.mulf %3, %3 : vector<2x16xf32>
    %9 = arith.subf %7, %8 : vector<2x16xf32>
    %cst_5 = arith.constant 0.000000e+00 : f32
    %10 = vector.broadcast %cst_5 : f32 to vector<2x16xf32>
    %11 = arith.maximumf %9, %10 : vector<2x16xf32>
    %12 = math.sqrt %11 : vector<2x16xf32>
    %13 = arith.addf %12, %3 : vector<2x16xf32>
    %c0_6 = arith.constant 0 : index
    %c0_7 = arith.constant 0 : index
    %14 = vector.load %arg2[%c0_6, %c0_7] : memref<16x4xf32, #tpu.memory_space<vmem>>, vector<16x4xf32>
    %cst_8 = arith.constant dense<0.000000e+00> : vector<2x4xf32>
    %15 = tpu.matmul %13, %14, %cst_8 {dimension_numbers = #tpu.dot_dimension_numbers<[1], [0], [0], [1], [0, 0, 1, 1], [], []>} : vector<2x16xf32>, vector<16x4xf32>, vector<2x4xf32> -> vector<2x4xf32>
    %c0_9 = arith.constant 0 : index
    %c0_10 = arith.constant 0 : index
    %16 = vector.load %arg3[%c0_9, %c0_10] : memref<1x4xf32, #tpu.memory_space<vmem>>, vector<1x4xf32>
    %17 = vector.broadcast %16 : vector<1x4xf32> to vector<2x4xf32>
    %18 = arith.addf %15, %17 : vector<2x4xf32>
    %cst_11 = arith.constant 0.000000e+00 : f32
    %19 = vector.broadcast %cst_11 : f32 to vector<2x4xf32>
    %20 = arith.maximumf %18, %19 : vector<2x4xf32>
    %c0_12 = arith.constant 0 : index
    %c0_13 = arith.constant 0 : index
    %21 = vector.load %arg4[%c0_12, %c0_13] : memref<4x16xf32, #tpu.memory_space<vmem>>, vector<4x16xf32>
    %cst_14 = arith.constant dense<0.000000e+00> : vector<2x16xf32>
    %22 = tpu.matmul %20, %21, %cst_14 {dimension_numbers = #tpu.dot_dimension_numbers<[1], [0], [0], [1], [0, 0, 1, 1], [], []>} : vector<2x4xf32>, vector<4x16xf32>, vector<2x16xf32> -> vector<2x16xf32>
    %c0_15 = arith.constant 0 : index
    %c0_16 = arith.constant 0 : index
    %23 = vector.load %arg5[%c0_15, %c0_16] : memref<1x16xf32, #tpu.memory_space<vmem>>, vector<1x16xf32>
    %24 = vector.broadcast %23 : vector<1x16xf32> to vector<2x16xf32>
    %25 = arith.addf %22, %24 : vector<2x16xf32>
    %26 = arith.negf %25 : vector<2x16xf32>
    %27 = math.exp %26 : vector<2x16xf32>
    %cst_17 = arith.constant 1.000000e+00 : f32
    %28 = vector.broadcast %cst_17 : f32 to vector<2x16xf32>
    %29 = arith.addf %28, %27 : vector<2x16xf32>
    %30 = arith.divf %28, %29 : vector<2x16xf32>
    %31 = vector.shape_cast %30 : vector<2x16xf32> to vector<2x16x1xf32>
    %cst_18 = arith.constant 1.000000e+00 : f32
    %32 = vector.broadcast %cst_18 : f32 to vector<2x16x1xf32>
    %33 = arith.addf %31, %32 : vector<2x16x1xf32>
    %34 = vector.broadcast %33 : vector<2x16x1xf32> to vector<2x16x256xf32>
    %35 = arith.mulf %0, %34 : vector<2x16x256xf32>
    %c0_19 = arith.constant 0 : index
    %c0_20 = arith.constant 0 : index
    %c0_21 = arith.constant 0 : index
    %36 = vector.load %arg6[%c0_19, %c0_20, %c0_21] : memref<2x16x256xf32, #tpu.memory_space<vmem>>, vector<2x16x256xf32>
    tpu.vector_store %arg6[%c0_19, %c0_20, %c0_21], %35 {strides = array<i32>} : memref<2x16x256xf32, #tpu.memory_space<vmem>>, vector<2x16x256xf32>,
    return
  }
  func.func @transform_0(%arg0: i32) -> (i32, i32, i32) {
    %c0_i32 = arith.constant 0 : i32
    %c0_i32_0 = arith.constant 0 : i32
    %c0_i32_1 = arith.constant 0 : i32
    return %arg0, %c0_i32, %c0_i32_0 : i32, i32, i32
  }
  func.func @transform_1(%arg0: i32) -> (i32, i32) {
    %c0_i32 = arith.constant 0 : i32
    %c0_i32_0 = arith.constant 0 : i32
    %c0_i32_1 = arith.constant 0 : i32
    return %c0_i32, %c0_i32_0 : i32, i32
  }
  func.func @transform_2(%arg0: i32) -> (i32, i32) {
    %c0_i32 = arith.constant 0 : i32
    %c0_i32_0 = arith.constant 0 : i32
    %c0_i32_1 = arith.constant 0 : i32
    return %c0_i32, %c0_i32_0 : i32, i32
  }
  func.func @transform_3(%arg0: i32) -> (i32, i32) {
    %c0_i32 = arith.constant 0 : i32
    %c0_i32_0 = arith.constant 0 : i32
    %c0_i32_1 = arith.constant 0 : i32
    return %c0_i32, %c0_i32_0 : i32, i32
  }
  func.func @transform_4(%arg0: i32) -> (i32, i32) {
    %c0_i32 = arith.constant 0 : i32
    %c0_i32_0 = arith.constant 0 : i32
    %c0_i32_1 = arith.constant 0 : i32
    return %c0_i32, %c0_i32_0 : i32, i32
  }
  func.func @transform_5(%arg0: i32) -> (i32, i32, i32) {
    %c0_i32 = arith.constant 0 : i32
    %c0_i32_0 = arith.constant 0 : i32
    %c0_i32_1 = arith.constant 0 : i32
    return %arg0, %c0_i32, %c0_i32_0 : i32, i32, i32
  }
}

</mosaic_0001>

<bundles_post_ra>
// kernel: tpu_custom_call.1
= control target key start
LH: loop header
LB: loop body
LE: loop exit
PB: predicated region body
PF: predicated region fallthrough
CT: control target
= control target key end

     0   :  { %10 = vsyncpa [#allocation3], 0  ;;  %s1041_s0 = inlined_call_operand.hbm [shape: f32[4,16,256], index: 0, kind: input, shape index: {}]   ;;  %s1042_s1 = inlined_call_operand.vmem [shape: f32[16,4], index: 1, kind: input, shape index: {}]   ;;  %s1043_s2 = inlined_call_operand.vmem [shape: f32[1,4], index: 2, kind: input, shape index: {}]   ;;  %s1044_s3 = inlined_call_operand.vmem [shape: f32[4,16], index: 3, kind: input, shape index: {}]   ;;  %s1045_s4 = inlined_call_operand.vmem [shape: f32[1,16], index: 4, kind: input, shape index: {}]   ;;  %s1046_s5 = inlined_call_operand.hbm [shape: f32[4,16,256], index: 5, kind: output, shape index: {}]  }
   0x1   :  { %12 = vsyncpa [#allocation3 + $0x1], 0 }
   0x2   :  { %13 = vsyncpa [#allocation4], 0 }
   0x3   :  { %15 = vsyncpa [#allocation4 + $0x1], 0  ;;  %s818_s18 = smov 0   ;;  %s820_s19 = smov 0  }
   0x4   :  { %s822_s20 = smov 0   ;;  %s824_s21 = smov 0  }
   0x5 LB: > { %s839_s22 = sadd.s32 4294967295, %s782_s21   ;;  %s594_s23 = sadd.s32 4294967294, %s782_s21   ;;  %s782_s21 = sphi %s824_s21, %s1056_s21   ;;  %s778_s20 = sphi %s822_s20, %s1055_s20   ;;  %s774_s19 = sphi %s820_s19, %s1054_s19   ;;  %s770_s18 = sphi %s818_s18, %s1053_s18  }
   0x6   : > { %s843_s24 = sadd.s32 1, %s782_s21   ;;  %s28_s25 = sadd.s32 1, %s778_s20 }
   0x7   : > { %s25_s26 = ssub.s32 %s782_s21, %s843_s24  ;;  %p35_p0 = scmp.ne.s32.totalorder %s778_s20, %s774_s19 }
   0x8   : > { %p26_p1 = scmp.eq.s32.totalorder %s25_s26, 0  ;;  %p36_p2 = scmp.eq.s32.totalorder %s782_s21, 0 }
   0x9   : > { %p41_p3 = scmp.ne.s32.totalorder %s774_s19, %s770_s18  ;;  %p42_p4 = scmp.eq.s32.totalorder %s839_s22, 0 }
   0xa   : > { %s855_s27 = scalar_select %p26_p1, %s778_s20, %s28_s25  }
   0xb   : > { %p857_p5 = por %p36_p2, %p35_p0  ;;  %p861_p6 = por %p42_p4, %p41_p3 }
   0xc   : > { %p149_p7 = scmp.eq.s32.totalorder %s839_s22, 1  ;;  %p155_p8 = scmp.eq.s32.totalorder %s594_s23, 1 }
   0xd   : > { %p630_p10 = scmp.lt.s32.totalorder %s782_s21, 2  ;;  %s187_s7 = sand.u32 1, %s778_s20  }
   0xe   : > { %p868_p11 = por %p149_p7, %p35_p0  ;;  %p872_p12 = por %p155_p8, %p41_p3 }
   0xf   : > { %s615_s8 = sshll.u32 %s782_s21, 6  ;;  %s597_s9 = sshll.u32 %s187_s7, 6 }
  0x10   : > { %s197_s12 = scalar_lea.hbm %s1041_s0, %s615_s8  ;;  %s191_s14 = scalar_lea.vmem [#allocation2], %s597_s9 }
  0x11   : > { %s198_s13 = sshll.u32 %s197_s12, 4  ;;  %s200_s15 = sshll.u32 %s191_s14, 4  ;;  %s199_s13 = int_to_ptr.hbm [resolvable:$true] %s198_s13  ;;  %s201_s15 = int_to_ptr.vmem [resolvable:$true] %s200_s15 }
  0x12   : > { %p883_p13 = pnand %p630_p10, %p857_p5  ;;  %p601_p0 = scmp.ge.s32.totalorder %s782_s21, 1 }
  0x13   : > { %p208_p1 = scmp.lt.s32.totalorder %s782_s21, 3  ;;  %s188_s17 = scalar_lea.sflag [#allocation3], %s187_s7 }
  0x14   : > { %s686_s23 = sshra.s32 %s199_s13, 4  ;;  %p690_p3 = pneg %p883_p13  ;;  %s687_s23 = int_to_ptr.hbm [resolvable:$true] %s686_s23 }
  0x15   : > { %s688_s25 = scalar_lea.hbm %s687_s23, 64  ;;  %s693_s28 = scalar_lea.hbm %s1041_s0, 128 }
  0x16   : > { %p689_p2 = scmp.ne.s32.totalorder %s687_s23, %s688_s25  ;;  %p694_p5 = scmp.lt.s32.totalorder %s687_s23, %s1041_s0 }
  0x17   : > { %p695_p8 = scmp.lt.s32.totalorder %s693_s28, %s688_s25 }
  0x18   : > { %p691_p4 = pnand %p690_p3, %p689_p2 }
  0x19   : > { %p696_p10 = por %p695_p8, %p694_p5 }
  0x1a   : > { %p692_p7 = pneg %p691_p4 }
  0x1c   : > { %p697_p9 = pnand %p696_p10, %p692_p7 }
  0x1e   : > { %700 = shalt.err (!%p697_p9)
}
  0x1f   : > { %s784_s7 = smov 256   ;;  %s785_s11 = smov 16  }
  0x20   : > { %625 = dma.hbm_to_vmem [thread:$0]  (!%p883_p13), %s199_s13, 1024, %s201_s15, %s188_s17, %s784_s7, %s784_s7, %s785_s11  }
  0x21   : > { %p209_p2 = pnand %p601_p0, %p208_p1 }
  0x22   : > { %s904_s12 = sand.u32 (!%p209_p2), 1, %s774_s19  }
  0x23   : > { %212 = sbr.rel (%p209_p2) target bundleno = 624 (0x270), region = 40  ;;  %s602_s14 = sshll.u32 (!%p209_p2), %s904_s12, 6 }
  0x24   : > { %s215_s23 = scalar_lea.sflag (!%p209_p2), [#allocation3], %s904_s12  ;;  %s218_s25 = scalar_lea.vmem (!%p209_p2), [#allocation2], %s602_s14 }
  0x28   : > { %761 = dma.done.wait (%p861_p6), %s215_s23, 1024  }
  0x29   : > { %763 = vsyncadd (%p861_p6), %s215_s23, 4294966272  ;;  %v914_v0 = vld [vmem:[%s218_s25 + $0x20] sm:$0xff]  ;;  %v916_v1 = vld [vmem:[%s218_s25 + $0x28] sm:$0xff]  ;;  %vm375_vm8 = vcmask 130112   ;;  %vm380_vm9 = vcmask 1041409   ;;  %vm382_vm10 = vcmask 130048  }
  0x2a   : > { %v918_v2 = vld [vmem:[%s218_s25] sm:$0xff]  ;;  %v262_v3 = vadd.f32 %v916_v1, %v914_v0  ;;  %v922_v4 = vld [vmem:[%s218_s25 + $0x8] sm:$0xff]  ;;  %v930_v8 = vld [vmem:[%s218_s25 + $0x10] sm:$0xff]  ;;  %v276_v20 = vmul.f32 %v914_v0, %v914_v0  ;;  %v277_v21 = vmul.f32 %v916_v1, %v916_v1  ;;  %vm415_vm11 = vcmask 1043456   ;;  %s245_s7 = scalar_lea.vmem [#allocation5], %s602_s14  ;;  %s617_s11 = sshll.u32 %s839_s22, 6 }
  0x2b   : > { %v272_v5 = vmul.f32 %v918_v2, %v918_v2  ;;  %v256_v6 = vadd.f32 %v922_v4, %v918_v2  ;;  %v273_v7 = vmul.f32 %v922_v4, %v922_v4  ;;  %v932_v9 = vld [vmem:[%s218_s25 + $0x18] sm:$0xff]  ;;  %v934_v11 = vld [vmem:[%s218_s25 + $0x30] sm:$0xff]  ;;  %v274_v13 = vmul.f32 %v930_v8, %v930_v8  ;;  %v361_v24 = vld [vmem:[%s1042_s1 + $0x8] sm:$0xff]  ;;  %s517_s29 = scalar_lea.hbm %s1046_s5, %s617_s11  ;;  %s518_s13 = sshll.u32 %s245_s7, 4  ;;  %s519_s13 = int_to_ptr.vmem [resolvable:$true] %s518_s13 }
  0x2c   : > { %263 = vadd.xlane.f32.xlu1 %v262_v3  ;;  %v936_v12 = vld [vmem:[%s218_s25 + $0x38] sm:$0xff]  ;;  %v275_v14 = vmul.f32 %v932_v9, %v932_v9  ;;  %v259_v16 = vadd.f32 %v932_v9, %v930_v8  ;;  %v278_v18 = vmul.f32 %v934_v11, %v934_v11  ;;  %v286_v23 = vadd.f32 %v277_v21, %v276_v20  ;;  %v360_v25 = vld [vmem:[%s1042_s1] sm:$0xff]  ;;  %s520_s14 = sshll.u32 %s517_s29, 4  ;;  %s505_s22 = scalar_lea.sflag [#allocation4], %s904_s12  ;;  %s521_s14 = int_to_ptr.hbm [resolvable:$true] %s520_s14 }
  0x2d   : > { %257 = vadd.xlane.f32.xlu0 %v256_v6  ;;  %v280_v10 = vadd.f32 %v273_v7, %v272_v5  ;;  %v265_v15 = vadd.f32 %v936_v12, %v934_v11  ;;  %v279_v19 = vmul.f32 %v936_v12, %v936_v12  ;;  %399 = vmatpush.msra.mxu0 %v361_v24  ;;  %vm411_vm12 = vcmask 31744   ;;  %s730_s15 = sshra.s32 %s521_s14, 4  ;;  %s736_s8 = scalar_lea.hbm %s1046_s5, 128  ;;  %s731_s15 = int_to_ptr.hbm [resolvable:$true] %s730_s15 }
  0x2e   : > { %v283_v17 = vadd.f32 %v275_v14, %v274_v13  ;;  %s732_s16 = scalar_lea.hbm %s731_s15, 64  ;;  %p737_p0 = scmp.lt.s32.totalorder %s731_s15, %s1046_s5 }
  0x2f   : > { %281 = vadd.xlane.f32.xlu2 %v280_v10  ;;  %v289_v22 = vadd.f32 %v279_v19, %v278_v18  ;;  %400 = vmatpush.msra.mxu0 %v360_v25  ;;  %v370_v18 = vlaneseq  ;;  %p733_p6 = scmp.ne.s32.totalorder %s731_s15, %s732_s16  ;;  %p738_p1 = scmp.lt.s32.totalorder %s736_s8, %s732_s16 }
  0x31   : > { %p734_p9 = pnand %p733_p6, %p868_p11  ;;  %p739_p3 = por %p738_p1, %p737_p0 }
  0x33   : > { %p735_p13 = pneg %p734_p9 }
  0x34   : > { %266 = vadd.xlane.f32.xlu1 %v265_v15 }
  0x35   : > { %260 = vadd.xlane.f32.xlu0 %v259_v16  ;;  %p740_p4 = pnand %p739_p3, %p735_p13 }
  0x37   : > { %284 = vadd.xlane.f32.xlu2 %v283_v17 }
  0x3c   : > { %290 = vadd.xlane.f32.xlu1 %v289_v22 }
  0x3d   : > { %287 = vadd.xlane.f32.xlu0 %v286_v23 }
  0x9f   : > { %v264_v26 = vpop.xlane.xlu1 %263 }
  0xa0   : > { %v258_v27 = vpop.xlane.xlu0 %257  ;;  %v973_v41 = vmul.f32 0.00390625, %v264_v26 }
  0xa1   : > { %v960_v28 = vmul.f32 0.00390625, %v258_v27 }
  0xa2   : > { %v282_v29 = vpop.xlane.xlu2 %281  ;;  %v298_v50 = vmul.f32 %v973_v41, %v973_v41 }
  0xa3   : > { %v296_v30 = vmul.f32 %v960_v28, %v960_v28  ;;  %v292_v31 = vmul.f32 0.00390625, %v282_v29 }
  0xa5   : > { %v300_v32 = vsub.f32 %v292_v31, %v296_v30  ;;  %v371_v30 = vand.u32 127, %v370_v18 }
  0xa7   : > { %v964_v33 = vmax.f32 %v300_v32, 0.0  ;;  %v267_v34 = vpop.xlane.xlu1 %266 }
  0xa8   : > { %v261_v35 = vpop.xlane.xlu0 %260  ;;  %v971_v40 = vmul.f32 0.00390625, %v267_v34 }
  0xa9   : > { %674 = vrsqrt.f32 %v964_v33  ;;  %v967_v36 = vmul.f32 0.00390625, %v261_v35  ;;  %vm315_vm0 = vcmp.eq.f32.partialorder %v964_v33, inf  ;;  %v318_v26 = vand.u32 2147483648, %v964_v33 }
  0xaa   : > { %v285_v37 = vpop.xlane.xlu2 %284  ;;  %v299_v46 = vmul.f32 %v971_v40, %v971_v40  ;;  %vm317_vm3 = vcmp.eq.f32.partialorder %v964_v33, 0.0  ;;  %v373_v35 = vadd.s32 4294967288, %v371_v30 }
  0xab   : > { %v297_v38 = vmul.f32 %v967_v36, %v967_v36  ;;  %v293_v39 = vmul.f32 0.00390625, %v285_v37 }
  0xad   : > { %v301_v42 = vsub.f32 %v293_v39, %v297_v38 }
  0xaf   : > { %v675_v43 = vpop.eup %674  ;;  %v305_v44 = vmax.f32 %v301_v42, 0.0  ;;  %v291_v45 = vpop.xlane.xlu1 %290 }
  0xb0   : > { %v295_v47 = vmul.f32 0.00390625, %v291_v45  ;;  %v288_v48 = vpop.xlane.xlu0 %287  ;;  %v309_v49 = vmul.f32 %v675_v43, %v964_v33 }
  0xb1   : > { %676 = vrsqrt.f32 %v305_v44  ;;  %v294_v51 = vmul.f32 0.00390625, %v288_v48  ;;  %vm327_vm1 = vcmp.eq.f32.partialorder %v305_v44, inf  ;;  %v330_v21 = vand.u32 2147483648, %v305_v44 }
  0xb2   : > { %v303_v52 = vsub.f32 %v295_v47, %v299_v46  ;;  %v310_v53 = vmul.f32 %v675_v43, %v309_v49  ;;  %vm329_vm2 = vcmp.eq.f32.partialorder %v305_v44, 0.0 }
  0xb3   : > { %v302_v54 = vsub.f32 %v294_v51, %v298_v50 }
  0xb4   : > { %v307_v55 = vmax.f32 %v303_v52, 0.0  ;;  %v311_v56 = vmul.f32 0.5, %v310_v53 }
  0xb5   : > { %v306_v57 = vmax.f32 %v302_v54, 0.0 }
  0xb6   : > { %678 = vrsqrt.f32 %v307_v55  ;;  %v312_v59 = vsub.f32 1.5, %v311_v56  ;;  %vm351_vm4 = vcmp.eq.f32.partialorder %v307_v55, inf  ;;  %v354_v38 = vand.u32 2147483648, %v307_v55 }
  0xb7   : > { %v677_v58 = vpop.eup %676  ;;  %680 = vrsqrt.f32 %v306_v57  ;;  %vm339_vm5 = vcmp.eq.f32.partialorder %v306_v57, inf  ;;  %v342_v42 = vand.u32 2147483648, %v306_v57  ;;  %vm353_vm6 = vcmp.eq.f32.partialorder %v307_v55, 0.0 }
  0xb8   : > { %v321_v60 = vmul.f32 %v677_v58, %v305_v44  ;;  %v313_v63 = vmul.f32 %v675_v43, %v312_v59  ;;  %vm341_vm7 = vcmp.eq.f32.partialorder %v306_v57, 0.0  ;;  %v673_v59 = vld [vmem:[%s1045_s4] ss:$0 sm:$0xff] }
  0xba   : > { %v322_v61 = vmul.f32 %v677_v58, %v321_v60  ;;  %v314_v14 = vmul.f32 %v313_v63, %v964_v33 }
  0xbc   : > { %v679_v62 = vpop.eup %678  ;;  %v323_v3 = vmul.f32 0.5, %v322_v61  ;;  %v316_v23 = vsel %vm315_vm0, %v964_v33, %v314_v14 }
  0xbd   : > { %v681_v5 = vpop.eup %680  ;;  %v345_v6 = vmul.f32 %v679_v62, %v307_v55  ;;  %v319_v32 = vsel %vm317_vm3, %v318_v26, %v316_v23 }
  0xbe   : > { %v324_v7 = vsub.f32 1.5, %v323_v3  ;;  %v333_v10 = vmul.f32 %v681_v5, %v306_v57  ;;  %v356_v46 = vadd.f32 %v319_v32, %v960_v28  ;;  %v406_v28 = vld [vmem:[%s1044_s3] sm:$0xf] }
  0xbf   : > { %v346_v13 = vmul.f32 %v679_v62, %v345_v6  ;;  %605 = vmatpush.msk.msra.mxu1 %vm415_vm11, %v406_v28 }
  0xc0   : > { %v325_v15 = vmul.f32 %v677_v58, %v324_v7  ;;  %v334_v16 = vmul.f32 %v681_v5, %v333_v10  ;;  %v372_v51 = vperm.slane %v356_v46, %v371_v30 }
  0xc1   : > { %v347_v17 = vmul.f32 0.5, %v346_v13 }
  0xc2   : > { %v326_v19 = vmul.f32 %v325_v15, %v305_v44  ;;  %v335_v20 = vmul.f32 0.5, %v334_v16 }
  0xc3   : > { %v348_v22 = vsub.f32 1.5, %v347_v17 }
  0xc4   : > { %v328_v24 = vsel %vm327_vm1, %v305_v44, %v326_v19  ;;  %v336_v25 = vsub.f32 1.5, %v335_v20 }
  0xc5   : > { %v331_v27 = vsel %vm329_vm2, %v330_v21, %v328_v24  ;;  %v349_v29 = vmul.f32 %v679_v62, %v348_v22 }
  0xc6   : > { %v337_v31 = vmul.f32 %v681_v5, %v336_v25  ;;  %v357_v39 = vadd.f32 %v331_v27, %v967_v36 }
  0xc7   : > { %v350_v34 = vmul.f32 %v349_v29, %v307_v55 }
  0xc8   : > { %v338_v37 = vmul.f32 %v337_v31, %v306_v57  ;;  %v374_v49 = vperm.slane %v357_v39, %v373_v35 }
  0xc9   : > { %v352_v43 = vsel %vm351_vm4, %v307_v55, %v350_v34 }
  0xca   : > { %v340_v44 = vsel %vm339_vm5, %v306_v57, %v338_v37  ;;  %v355_v45 = vsel %vm353_vm6, %v354_v38, %v352_v43  ;;  %v376_v36 = vsel %vm375_vm8, %v374_v49, %v372_v51  ;;  %v460_v57 = vshrl.u32 %v370_v18, 7 }
  0xcb   : > { %v343_v47 = vsel %vm341_vm7, %v342_v42, %v340_v44  ;;  %v359_v33 = vadd.f32 %v355_v45, %v971_v40  ;;  %v672_v40 = vld [vmem:[%s1043_s2] ss:$0 sm:$0xff] }
  0xcc   : > { %v358_v48 = vadd.f32 %v343_v47, %v973_v41  ;;  %670 = vset.pattern.permute.xlu1 %v460_v57  ;;  %668 = vset.pattern.permute.xlu2 %v460_v57  ;;  %v467_v58 = vadd.s32 8, %v460_v57 }
  0xcd   : > { %v378_v50 = vperm.slane %v359_v33, %v373_v35 }
  0xce   : > { %v377_v52 = vperm.slane %v358_v48, %v371_v30  ;;  %669 = vset.pattern.permute.xlu0 %v467_v58 }
  0xd0   : > { %v379_v53 = vsel %vm375_vm8, %v378_v50, %v377_v52 }
  0xd1   : > { %v381_v54 = vsel %vm380_vm9, %v379_v53, %v376_v36 }
  0xd2   : > { %604 = vmatmul.msk.f32.vlgmr.msra.gmra.mxu0 %vm382_vm10, %v381_v54 }
 0x14f   : > { %v402_v41 = vpop.f32.mrf.mxu0 }
 0x150   : > { %v403_v55 = vadd.f32 %v672_v40, %v402_v41 }
 0x152   : > { %v405_v56 = vmax.f32 %v403_v55, 0.0 }
 0x154   : > { %606 = vmatmul.msk.f32.vlgmr.msra.gmra.mxu1 %vm411_vm12, %v405_v56 }
 0x1d1   : > { %v436_v60 = vpop.f32.mrf.mxu1 }
 0x1d2   : > { %v437_v61 = vadd.f32 %v673_v59, %v436_v60 }
 0x1d4   : > { %v607_v62 = vmul.f32 -1.442695, %v437_v61 }
 0x1d6   : > { %682 = vpow2.f32 %v607_v62 }
 0x1dc   : > { %v683_v63 = vpop.eup %682 }
 0x1dd   : > { %v442_v3 = vadd.f32 1.0, %v683_v63 }
 0x1df   : > { %684 = vrcp.f32 %v442_v3  ;;  %v454_v10 = vand.u32 2147483648, %v442_v3  ;;  %v452_v14 = vand.u32 2147483647, %v442_v3  ;;  %vm448_vm14 = vweird.f32 %v442_v3 }
 0x1e1   : > { %v455_v16 = vor.u32 1.1754944e-38, %v454_v10  ;;  %vm453_vm0 = vcmp.eq.f32.partialorder %v452_v14, 8.507059e+37 }
 0x1e5   : > { %v685_v5 = vpop.eup %684 }
 0x1e6   : > { %v444_v6 = vmul.f32 %v685_v5, %v442_v3  ;;  %vm449_vm13 = vweird.f32 %v685_v5 }
 0x1e7   : > { %vm450_vm15 = vmor %vm448_vm14, %vm449_vm13 }
 0x1e8   : > { %v445_v7 = vsub.f32 1.0, %v444_v6 }
 0x1ea   : > { %v446_v13 = vmul.f32 %v685_v5, %v445_v7 }
 0x1ec   : > { %v447_v15 = vadd.f32 %v685_v5, %v446_v13 }
 0x1ee   : > { %v451_v17 = vsel %vm450_vm15, %v685_v5, %v447_v15 }
 0x1ef   : > { %v456_v18 = vsel %vm453_vm0, %v455_v16, %v451_v17 }
 0x1f0   : > { %v471_v19 = vperm.slane %v456_v18, 1  ;;  %v458_v20 = vperm.slane %v456_v18, 0 }
 0x1f2   : > { %476 = vperm.xlu1 %670, %v471_v19   ;;  %469 = vperm.xlu0 %669, %v458_v20  }
 0x1f3   : > { %463 = vperm.xlu2 %668, %v458_v20  }
 0x1fb   : > { %671 = vset.pattern.permute.xlu2 %v467_v58 }
 0x203   : > { %482 = vperm.xlu2 %671, %v471_v19  }
 0x24d   : > { %v464_v21 = vpop.permute.xlu2 %463 }
 0x24e   : > { %v484_v22 = vadd.f32 1.0, %v464_v21 }
 0x250   : > { %v488_v23 = vmul.f32 %v484_v22, %v918_v2  ;;  %v489_v24 = vmul.f32 %v484_v22, %v922_v4 }
 0x252   : > { %496 = vst [vmem:[%s245_s7] sm:$0xff] %v488_v23 }
 0x253   : > { %497 = vst [vmem:[%s245_s7 + $0x8] sm:$0xff] %v489_v24 }
 0x25d   : > { %v483_v25 = vpop.permute.xlu2 %482 }
 0x25e   : > { %v487_v26 = vadd.f32 1.0, %v483_v25 }
 0x260   : > { %v494_v27 = vmul.f32 %v487_v26, %v934_v11  ;;  %v495_v29 = vmul.f32 %v487_v26, %v936_v12 }
 0x262   : > { %502 = vst [vmem:[%s245_s7 + $0x30] sm:$0xff] %v494_v27 }
 0x263   : > { %503 = vst [vmem:[%s245_s7 + $0x38] sm:$0xff] %v495_v29 }
 0x264   : > { %v477_v2 = vpop.permute.xlu1 %476  ;;  %v470_v4 = vpop.permute.xlu0 %469 }
 0x265   : > { %v486_v30 = vadd.f32 1.0, %v477_v2  ;;  %v485_v31 = vadd.f32 1.0, %v470_v4 }
 0x267   : > { %v492_v32 = vmul.f32 %v486_v30, %v914_v0  ;;  %v493_v11 = vmul.f32 %v486_v30, %v916_v1  ;;  %v490_v12 = vmul.f32 %v485_v31, %v930_v8  ;;  %v491_v34 = vmul.f32 %v485_v31, %v932_v9 }
 0x269   : > { %500 = vst [vmem:[%s245_s7 + $0x20] sm:$0xff] %v492_v32 }
 0x26a   : > { %501 = vst [vmem:[%s245_s7 + $0x28] sm:$0xff] %v493_v11 }
 0x26b   : > { %498 = vst [vmem:[%s245_s7 + $0x10] sm:$0xff] %v490_v12 }
 0x26c   : > { %499 = vst [vmem:[%s245_s7 + $0x18] sm:$0xff] %v491_v34 }
 0x26d   : > { %743 = shalt.err (!%p740_p4)
}
 0x26e   : > { %s786_s12 = smov 256   ;;  %s787_s10 = smov 16  }
 0x26f   : > { %620 = dma.vmem_to_hbm [thread:$0]  (%p868_p11), %s519_s13, 1024, %s521_s14, %s505_s22, %s786_s12, %s786_s12, %s787_s10  }
 0x270 PF: > { %s535_s7 = sand.u32 1, %s770_s18   ;;  %p1052_p7 = scmp.ge.s32.totalorder %s782_s21, 2 }
 0x271   : > { %s536_s11 = scalar_lea.sflag [#allocation4], %s535_s7 }
 0x272   : > { %p627_p5 = pnand %p1052_p7, %p872_p12 }
 0x274   : > { %p628_p8 = pneg %p627_p5 }
 0x276   : > { %765 = dma.done.wait (%p628_p8), %s536_s11, 1024  }
 0x277   : > { %767 = vsyncadd (%p628_p8), %s536_s11, 4294966272  ;;  %p18_p10 = scmp.ge.s32.totalorder %s843_s24, 4   ;;  %s1053_s18 = smov %s774_s19 }
 0x278   : > { %s1054_s19 = smov %s778_s20  ;;  %s1055_s20 = smov %s855_s27 }
 0x279   : > { %s1056_s21 = smov %s843_s24  ;;  %20 = sbr.rel (!%p18_p10) target bundleno = 5 (0x5), region = 85 }
 0x27e   :  { %542 = vsyncpa [#allocation3], 1 }
 0x27f   :  { %544 = vsyncpa [#allocation3 + $0x1], 1 }
 0x280   :  { %545 = vsyncpa [#allocation4], 1 }
 0x281   :  { %547 = vsyncpa [#allocation4 + $0x1], 1 }

</bundles_post_ra>
